<compile_context>
chip_gen: v6e
topology: v6e:2x2x1
jax: 0.10.0
libtpu: 0.0.40
codegen_flags: <defaults>
</compile_context>

<pallas_src>
import functools

import jax
import jax.numpy as jnp
from jax.experimental import pallas as pl
from jax.experimental.pallas import tpu as pltpu


def _sdpa_kernel(x_ref, wq_ref, bq_ref, wk_ref, bk_ref, wv_ref, bv_ref,
                 o_ref, *, scale):
    # Blocks (leading batch dim squeezed away by the BlockSpec):
    #   x_ref : (C_in, N)      wX_ref : (C_out, C_in)     bX_ref : (C_out, 1)
    x = x_ref[...].astype(jnp.float32)

    wq = wq_ref[...].astype(jnp.float32)
    wk = wk_ref[...].astype(jnp.float32)
    wv = wv_ref[...].astype(jnp.float32)
    bq = bq_ref[...].astype(jnp.float32)   # (C_out, 1) -> lane-broadcast over N
    bk = bk_ref[...].astype(jnp.float32)
    bv = bv_ref[...].astype(jnp.float32)

    # 1x1-conv projections == channel matmuls (MXU), accumulate in f32.
    q = jnp.dot(wq, x, preferred_element_type=jnp.float32) + bq   # (C_out, N)
    k = jnp.dot(wk, x, preferred_element_type=jnp.float32) + bk   # (C_out, N)
    v = jnp.dot(wv, x, preferred_element_type=jnp.float32) + bv   # (C_out, N)

    # Channel-attention scores: contract over the spatial (lane) axis without
    # materializing a transpose.
    s = jax.lax.dot_general(
        q, k, (((1,), (1,)), ((), ())),
        preferred_element_type=jnp.float32) * scale                # (C_out, C_out)

    # Numerically stable softmax over the last dim.
    s = s - jnp.max(s, axis=-1, keepdims=True)
    p = jnp.exp(s)
    p = p / jnp.sum(p, axis=-1, keepdims=True)

    attended = jnp.dot(p, v, preferred_element_type=jnp.float32)   # (C_out, N)

    # Residual add (module requires C_out == C_in).
    o_ref[...] = (x + attended).astype(o_ref.dtype)


def scaled_dot_product_attention(x, wq, bq, wk, bk, wv, bv):
    """x: (B, C_in, H, W); wX: (C_out, C_in); bX: (C_out,). Returns (B, C_out, H, W)."""
    B, C_in, H, W = x.shape
    C_out = wq.shape[0]
    N = H * W

    # Plain reshapes only -- no pad / slice HBM round-trips in the wrapper.
    x3 = x.reshape(B, C_in, N)
    bq2 = bq.reshape(C_out, 1)
    bk2 = bk.reshape(C_out, 1)
    bv2 = bv.reshape(C_out, 1)

    scale = 1.0 / float(C_out) ** 0.5
    kernel = functools.partial(_sdpa_kernel, scale=scale)

    # One grid step per batch element; the full (C, N) slab for that batch
    # element lives in VMEM (for SCAUNet-scale feature maps this is well under
    # the VMEM budget on all of v5e/v6e/v7x).
    out3 = pl.pallas_call(
        kernel,
        out_shape=jax.ShapeDtypeStruct((B, C_out, N), x.dtype),
        grid=(B,),
        in_specs=[
            pl.BlockSpec((None, C_in, N), lambda b: (b, 0, 0)),   # x (batch-squeezed)
            pl.BlockSpec((C_out, C_in), lambda b: (0, 0)),        # Wq
            pl.BlockSpec((C_out, 1), lambda b: (0, 0)),           # bq
            pl.BlockSpec((C_out, C_in), lambda b: (0, 0)),        # Wk
            pl.BlockSpec((C_out, 1), lambda b: (0, 0)),           # bk
            pl.BlockSpec((C_out, C_in), lambda b: (0, 0)),        # Wv
            pl.BlockSpec((C_out, 1), lambda b: (0, 0)),           # bv
        ],
        out_specs=pl.BlockSpec((None, C_out, N), lambda b: (b, 0, 0)),
        compiler_params=pltpu.CompilerParams(
            dimension_semantics=("parallel",)),                   # shard batch across TCs (v7x)
    )(x3, wq, bq2, wk, bk2, wv, bv2)

    return out3.reshape(B, C_out, H, W)


def _sdpa_ref(x, wq, bq, wk, bk, wv, bv):
    """Pure-JAX reference matching the PyTorch module."""
    B, C_in, H, W = x.shape
    C = wq.shape[0]
    N = H * W
    hp = jax.lax.Precision.HIGHEST
    xf = x.reshape(B, C_in, N).astype(jnp.float32)
    q = jnp.einsum('oc,bcn->bon', wq, xf, precision=hp) + bq[None, :, None]
    k = jnp.einsum('oc,bcn->bon', wk, xf, precision=hp) + bk[None, :, None]
    v = jnp.einsum('oc,bcn->bon', wv, xf, precision=hp) + bv[None, :, None]
    attn = jnp.einsum('bon,bpn->bop', q, k, precision=hp) / (C ** 0.5)
    attn = jax.nn.softmax(attn, axis=-1)
    out = jnp.einsum('bop,bpn->bon', attn, v, precision=hp)
    return (x + out.reshape(B, C, H, W)).astype(x.dtype)


if __name__ == "__main__":
    key = jax.random.PRNGKey(0)
    # Small shapes consistent with the module; in_channels == out_channels so
    # the residual `x + attended_value` is well-defined (as the PyTorch module assumes).
    B, C, H, W = 2, 4, 16, 16
    k_x, k_wq, k_bq, k_wk, k_bk, k_wv, k_bv = jax.random.split(key, 7)

    x = jax.random.normal(k_x, (B, C, H, W), dtype=jnp.float32)
    wq = jax.random.normal(k_wq, (C, C), dtype=jnp.float32) * 0.5
    wk = jax.random.normal(k_wk, (C, C), dtype=jnp.float32) * 0.5
    wv = jax.random.normal(k_wv, (C, C), dtype=jnp.float32) * 0.5
    bq = jax.random.normal(k_bq, (C,), dtype=jnp.float32) * 0.1
    bk = jax.random.normal(k_bk, (C,), dtype=jnp.float32) * 0.1
    bv = jax.random.normal(k_bv, (C,), dtype=jnp.float32) * 0.1

    y = scaled_dot_product_attention(x, wq, bq, wk, bk, wv, bv)
    y = jax.block_until_ready(y)

    y_ref = _sdpa_ref(x, wq, bq, wk, bk, wv, bv)
    assert y.shape == x.shape and y.dtype == x.dtype
    err = jnp.max(jnp.abs(y - y_ref))
    assert jnp.allclose(y, y_ref, atol=2e-3, rtol=2e-3), f"mismatch vs ref, max abs err={err}"

    print("KERNEL_OK")
</pallas_src>

<mosaic_0001>
module attributes {stable_mosaic.version = 11 : i64} {
  func.func @_sdpa_kernel(%arg0: i32, %arg1: memref<1x4x256xf32, #tpu.memory_space<vmem>>, %arg2: memref<4x4xf32, #tpu.memory_space<vmem>>, %arg3: memref<4x1xf32, #tpu.memory_space<vmem>>, %arg4: memref<4x4xf32, #tpu.memory_space<vmem>>, %arg5: memref<4x1xf32, #tpu.memory_space<vmem>>, %arg6: memref<4x4xf32, #tpu.memory_space<vmem>>, %arg7: memref<4x1xf32, #tpu.memory_space<vmem>>, %arg8: memref<1x4x256xf32, #tpu.memory_space<vmem>>) attributes {dimension_semantics = [#tpu.dimension_semantics<parallel>], iteration_bounds = array<i64: 2>, scalar_prefetch = 0 : i64, scratch_operands = 0 : i64, tpu.core_type = #tpu.core_type<tc>, window_params = [{transform_indices = @transform_0, window_bounds = array<i64: 1, 4, 256>}, {pipeline_mode = #tpu.pipeline_mode<synchronous>, transform_indices = @transform_1, window_bounds = array<i64: 4, 4>}, {pipeline_mode = #tpu.pipeline_mode<synchronous>, transform_indices = @transform_2, window_bounds = array<i64: 4, 1>}, {pipeline_mode = #tpu.pipeline_mode<synchronous>, transform_indices = @transform_3, window_bounds = array<i64: 4, 4>}, {pipeline_mode = #tpu.pipeline_mode<synchronous>, transform_indices = @transform_4, window_bounds = array<i64: 4, 1>}, {pipeline_mode = #tpu.pipeline_mode<synchronous>, transform_indices = @transform_5, window_bounds = array<i64: 4, 4>}, {pipeline_mode = #tpu.pipeline_mode<synchronous>, transform_indices = @transform_6, window_bounds = array<i64: 4, 1>}, {transform_indices = @transform_7, window_bounds = array<i64: 1, 4, 256>}]} {
    %c0 = arith.constant 0 : index
    %c0_0 = arith.constant 0 : index
    %c0_1 = arith.constant 0 : index
    %0 = vector.load %arg1[%c0, %c0_0, %c0_1] : memref<1x4x256xf32, #tpu.memory_space<vmem>>, vector<1x4x256xf32>
    %1 = vector.shape_cast %0 : vector<1x4x256xf32> to vector<4x256xf32>
    %c0_2 = arith.constant 0 : index
    %c0_3 = arith.constant 0 : index
    %2 = vector.load %arg2[%c0_2, %c0_3] : memref<4x4xf32, #tpu.memory_space<vmem>>, vector<4x4xf32>
    %c0_4 = arith.constant 0 : index
    %c0_5 = arith.constant 0 : index
    %3 = vector.load %arg4[%c0_4, %c0_5] : memref<4x4xf32, #tpu.memory_space<vmem>>, vector<4x4xf32>
    %c0_6 = arith.constant 0 : index
    %c0_7 = arith.constant 0 : index
    %4 = vector.load %arg6[%c0_6, %c0_7] : memref<4x4xf32, #tpu.memory_space<vmem>>, vector<4x4xf32>
    %c0_8 = arith.constant 0 : index
    %c0_9 = arith.constant 0 : index
    %5 = vector.load %arg3[%c0_8, %c0_9] : memref<4x1xf32, #tpu.memory_space<vmem>>, vector<4x1xf32>
    %c0_10 = arith.constant 0 : index
    %c0_11 = arith.constant 0 : index
    %6 = vector.load %arg5[%c0_10, %c0_11] : memref<4x1xf32, #tpu.memory_space<vmem>>, vector<4x1xf32>
    %c0_12 = arith.constant 0 : index
    %c0_13 = arith.constant 0 : index
    %7 = vector.load %arg7[%c0_12, %c0_13] : memref<4x1xf32, #tpu.memory_space<vmem>>, vector<4x1xf32>
    %cst = arith.constant dense<0.000000e+00> : vector<4x256xf32>
    %8 = tpu.matmul %2, %1, %cst {dimension_numbers = #tpu.dot_dimension_numbers<[1], [0], [0], [1], [0, 0, 1, 1], [], []>} : vector<4x4xf32>, vector<4x256xf32>, vector<4x256xf32> -> vector<4x256xf32>
    %9 = vector.broadcast %5 : vector<4x1xf32> to vector<4x256xf32>
    %10 = arith.addf %8, %9 : vector<4x256xf32>
    %cst_14 = arith.constant dense<0.000000e+00> : vector<4x256xf32>
    %11 = tpu.matmul %3, %1, %cst_14 {dimension_numbers = #tpu.dot_dimension_numbers<[1], [0], [0], [1], [0, 0, 1, 1], [], []>} : vector<4x4xf32>, vector<4x256xf32>, vector<4x256xf32> -> vector<4x256xf32>
    %12 = vector.broadcast %6 : vector<4x1xf32> to vector<4x256xf32>
    %13 = arith.addf %11, %12 : vector<4x256xf32>
    %cst_15 = arith.constant dense<0.000000e+00> : vector<4x256xf32>
    %14 = tpu.matmul %4, %1, %cst_15 {dimension_numbers = #tpu.dot_dimension_numbers<[1], [0], [0], [1], [0, 0, 1, 1], [], []>} : vector<4x4xf32>, vector<4x256xf32>, vector<4x256xf32> -> vector<4x256xf32>
    %15 = vector.broadcast %7 : vector<4x1xf32> to vector<4x256xf32>
    %16 = arith.addf %14, %15 : vector<4x256xf32>
    %cst_16 = arith.constant dense<0.000000e+00> : vector<4x4xf32>
    %17 = tpu.matmul %10, %13, %cst_16 {dimension_numbers = #tpu.dot_dimension_numbers<[1], [1], [0], [0], [0, 0, 1, 0], [], []>} : vector<4x256xf32>, vector<4x256xf32>, vector<4x4xf32> -> vector<4x4xf32>
    %cst_17 = arith.constant 5.000000e-01 : f32
    %18 = vector.broadcast %cst_17 : f32 to vector<4x4xf32>
    %19 = arith.mulf %17, %18 : vector<4x4xf32>
    %cst_18 = arith.constant dense<0xFF800000> : vector<4xf32>
    %20 = vector.multi_reduction <maximumf>, %19, %cst_18 [1] : vector<4x4xf32> to vector<4xf32>
    %21 = vector.shape_cast %20 : vector<4xf32> to vector<4x1xf32>
    %22 = vector.broadcast %21 : vector<4x1xf32> to vector<4x4xf32>
    %23 = arith.subf %19, %22 : vector<4x4xf32>
    %24 = math.exp %23 : vector<4x4xf32>
    %cst_19 = arith.constant dense<0.000000e+00> : vector<4xf32>
    %25 = vector.multi_reduction <add>, %24, %cst_19 [1] : vector<4x4xf32> to vector<4xf32>
    %26 = vector.shape_cast %25 : vector<4xf32> to vector<4x1xf32>
    %27 = vector.broadcast %26 : vector<4x1xf32> to vector<4x4xf32>
    %28 = arith.divf %24, %27 : vector<4x4xf32>
    %cst_20 = arith.constant dense<0.000000e+00> : vector<4x256xf32>
    %29 = tpu.matmul %28, %16, %cst_20 {dimension_numbers = #tpu.dot_dimension_numbers<[1], [0], [0], [1], [0, 0, 1, 1], [], []>} : vector<4x4xf32>, vector<4x256xf32>, vector<4x256xf32> -> vector<4x256xf32>
    %30 = arith.addf %1, %29 : vector<4x256xf32>
    %c0_21 = arith.constant 0 : index
    %c0_22 = arith.constant 0 : index
    %c0_23 = arith.constant 0 : index
    %31 = vector.load %arg8[%c0_21, %c0_22, %c0_23] : memref<1x4x256xf32, #tpu.memory_space<vmem>>, vector<1x4x256xf32>
    %32 = vector.shape_cast %31 : vector<1x4x256xf32> to vector<4x256xf32>
    %33 = vector.shape_cast %30 : vector<4x256xf32> to vector<1x4x256xf32>
    tpu.vector_store %arg8[%c0_21, %c0_22, %c0_23], %33 {strides = array<i32>} : memref<1x4x256xf32, #tpu.memory_space<vmem>>, vector<1x4x256xf32>,
    return
  }
  func.func @transform_0(%arg0: i32) -> (i32, i32, i32) {
    %c0_i32 = arith.constant 0 : i32
    %c0_i32_0 = arith.constant 0 : i32
    %c0_i32_1 = arith.constant 0 : i32
    return %arg0, %c0_i32, %c0_i32_0 : i32, i32, i32
  }
  func.func @transform_1(%arg0: i32) -> (i32, i32) {
    %c0_i32 = arith.constant 0 : i32
    %c0_i32_0 = arith.constant 0 : i32
    %c0_i32_1 = arith.constant 0 : i32
    return %c0_i32, %c0_i32_0 : i32, i32
  }
  func.func @transform_2(%arg0: i32) -> (i32, i32) {
    %c0_i32 = arith.constant 0 : i32
    %c0_i32_0 = arith.constant 0 : i32
    %c0_i32_1 = arith.constant 0 : i32
    return %c0_i32, %c0_i32_0 : i32, i32
  }
  func.func @transform_3(%arg0: i32) -> (i32, i32) {
    %c0_i32 = arith.constant 0 : i32
    %c0_i32_0 = arith.constant 0 : i32
    %c0_i32_1 = arith.constant 0 : i32
    return %c0_i32, %c0_i32_0 : i32, i32
  }
  func.func @transform_4(%arg0: i32) -> (i32, i32) {
    %c0_i32 = arith.constant 0 : i32
    %c0_i32_0 = arith.constant 0 : i32
    %c0_i32_1 = arith.constant 0 : i32
    return %c0_i32, %c0_i32_0 : i32, i32
  }
  func.func @transform_5(%arg0: i32) -> (i32, i32) {
    %c0_i32 = arith.constant 0 : i32
    %c0_i32_0 = arith.constant 0 : i32
    %c0_i32_1 = arith.constant 0 : i32
    return %c0_i32, %c0_i32_0 : i32, i32
  }
  func.func @transform_6(%arg0: i32) -> (i32, i32) {
    %c0_i32 = arith.constant 0 : i32
    %c0_i32_0 = arith.constant 0 : i32
    %c0_i32_1 = arith.constant 0 : i32
    return %c0_i32, %c0_i32_0 : i32, i32
  }
  func.func @transform_7(%arg0: i32) -> (i32, i32, i32) {
    %c0_i32 = arith.constant 0 : i32
    %c0_i32_0 = arith.constant 0 : i32
    %c0_i32_1 = arith.constant 0 : i32
    return %arg0, %c0_i32, %c0_i32_0 : i32, i32, i32
  }
}

</mosaic_0001>

<bundles_post_ra>
// kernel: tpu_custom_call.1
= control target key start
LH: loop header
LB: loop body
LE: loop exit
PB: predicated region body
PF: predicated region fallthrough
CT: control target
= control target key end

     0   :  { %12 = vsyncpa [#allocation3], 0  ;;  %s1204_s0 = inlined_call_operand.hbm [shape: f32[2,4,256], index: 0, kind: input, shape index: {}]   ;;  %s1205_s1 = inlined_call_operand.vmem [shape: f32[4,4], index: 1, kind: input, shape index: {}]   ;;  %s1206_s2 = inlined_call_operand.vmem [shape: f32[4,1], index: 2, kind: input, shape index: {}]   ;;  %s1207_s3 = inlined_call_operand.vmem [shape: f32[4,4], index: 3, kind: input, shape index: {}]   ;;  %s1208_s4 = inlined_call_operand.vmem [shape: f32[4,1], index: 4, kind: input, shape index: {}]   ;;  %s1209_s5 = inlined_call_operand.vmem [shape: f32[4,4], index: 5, kind: input, shape index: {}]   ;;  %s1210_s6 = inlined_call_operand.vmem [shape: f32[4,1], index: 6, kind: input, shape index: {}]   ;;  %s1211_s7 = inlined_call_operand.hbm [shape: f32[2,4,256], index: 7, kind: output, shape index: {}]  }
   0x1   :  { %14 = vsyncpa [#allocation3 + $0x1], 0 }
   0x2   :  { %15 = vsyncpa [#allocation4], 0 }
   0x3   :  { %17 = vsyncpa [#allocation4 + $0x1], 0  ;;  %s1021_s24 = smov 0   ;;  %s1023_s25 = smov 0  }
   0x4   :  { %s1025_s26 = smov 0   ;;  %s1027_s27 = smov 0  }
   0x5 LB: > { %s1042_s28 = sadd.s32 4294967295, %s975_s27   ;;  %s801_s29 = sadd.s32 4294967294, %s975_s27   ;;  %s975_s27 = sphi %s1027_s27, %s1228_s27   ;;  %s971_s26 = sphi %s1025_s26, %s1227_s26   ;;  %s967_s25 = sphi %s1023_s25, %s1226_s25   ;;  %s963_s24 = sphi %s1021_s24, %s1225_s24  }
   0x6   : > { %s1046_s30 = sadd.s32 1, %s975_s27   ;;  %s30_s8 = sadd.s32 1, %s971_s26 }
   0x7   : > { %s27_s9 = ssub.s32 %s975_s27, %s1046_s30  ;;  %p37_p0 = scmp.ne.s32.totalorder %s971_s26, %s967_s25 }
   0x8   : > { %p28_p1 = scmp.eq.s32.totalorder %s27_s9, 0  ;;  %p38_p2 = scmp.eq.s32.totalorder %s975_s27, 0 }
   0x9   : > { %p43_p3 = scmp.ne.s32.totalorder %s967_s25, %s963_s24  ;;  %p44_p4 = scmp.eq.s32.totalorder %s1042_s28, 0 }
   0xa   : > { %s1058_s10 = scalar_select %p28_p1, %s971_s26, %s30_s8  }
   0xb   : > { %p1060_p5 = por %p38_p2, %p37_p0  ;;  %p1064_p6 = por %p44_p4, %p43_p3 }
   0xc   : > { %p193_p7 = scmp.eq.s32.totalorder %s1042_s28, 1  ;;  %p199_p8 = scmp.eq.s32.totalorder %s801_s29, 1 }
   0xd   : > { %s1215_s12 = scalar_select %p1064_p6, 1, 0 }
   0xe   : > { %p841_p10 = scmp.lt.s32.totalorder %s975_s27, 2  ;;  %p1071_p11 = por %p193_p7, %p37_p0 }
   0xf   : > { %p1075_p12 = por %p199_p8, %p43_p3  ;;  %s237_s15 = sand.u32 1, %s971_s26  }
  0x10   : > { %s1216_s13 = scalar_select %p1071_p11, 1, 0 }
  0x11   : > { %s1217_s14 = scalar_select %p1075_p12, 1, 0 }
  0x12   : > { %s827_s16 = sshll.u32 %s975_s27, 7  ;;  %s804_s17 = sshll.u32 %s237_s15, 3 }
  0x13   : > { %s1084_s20 = scalar_lea.hbm %s1204_s0, %s827_s16  ;;  %s241_s21 = scalar_lea.vmem [#allocation2], %s804_s17 }
  0x14   : > { %s249_s22 = sshll.u32 %s241_s21, 4  ;;  %p1088_p13 = pnand %p841_p10, %p1060_p5  ;;  %s1092_s22 = int_to_ptr.vmem [resolvable:$true] %s249_s22 }
  0x15   : > { %s238_s29 = scalar_lea.sflag [#allocation3], %s237_s15  ;;  %s883_s8 = scalar_lea.hbm %s1084_s20, 128 }
  0x16   : > { %p884_p2 = scmp.ne.s32.totalorder %s1084_s20, %s883_s8  ;;  %p885_p3 = pneg %p1088_p13 }
  0x17   : > { %s888_s11 = scalar_lea.hbm %s1204_s0, 256  ;;  %p889_p5 = scmp.lt.s32.totalorder %s1084_s20, %s1204_s0 }
  0x18   : > { %p886_p4 = pnand %p885_p3, %p884_p2  ;;  %p890_p8 = scmp.lt.s32.totalorder %s888_s11, %s883_s8 }
  0x1a   : > { %p887_p7 = pneg %p886_p4  ;;  %p891_p10 = por %p890_p8, %p889_p5 }
  0x1c   : > { %p892_p9 = pnand %p891_p10, %p887_p7 }
  0x1e   : > { %895 = shalt.err (!%p892_p9)
}
  0x1f   : > { %s896_s15 = scalar_lea.vmem %s1092_s22, 128  ;;  %s977_s19 = smov [#allocation2]  }
  0x20   : > { %p897_p0 = scmp.ne.s32.totalorder %s1092_s22, %s896_s15  ;;  %s901_s21 = sshll.u32 %s977_s19, 4  ;;  %s902_s21 = int_to_ptr.vmem [resolvable:$false] %s901_s21 }
  0x21   : > { %s903_s9 = scalar_lea.vmem %s902_s21, 256  ;;  %p904_p4 = scmp.lt.s32.totalorder %s1092_s22, %s902_s21 }
  0x22   : > { %p899_p1 = pnand %p897_p0, %p885_p3  ;;  %p905_p12 = scmp.lt.s32.totalorder %s903_s9, %s896_s15 }
  0x24   : > { %p900_p2 = pneg %p899_p1  ;;  %p906_p11 = por %p905_p12, %p904_p4 }
  0x26   : > { %p907_p6 = pnand %p906_p11, %p900_p2 }
  0x28   : > { %910 = shalt.err (!%p907_p6)
}
  0x29   : > { %836 = dma.hbm_to_vmem [thread:$0]  (!%p1088_p13), %s1084_s20, 128, %s1092_s22, %s238_s29  }
  0x2a   : > { %p1219_p9 = scmp.lt.s32.totalorder %s975_s27, 3  ;;  %p1220_p7 = scmp.ge.s32.totalorder %s975_s27, 1 }
  0x2c   : > { %p255_p0 = pnand %p1220_p7, %p1219_p9 }
  0x2d   : > { %s1119_s8 = sand.u32 (!%p255_p0), 1, %s967_s25   ;;  %p1221_p6 = scmp.ne.s32.totalorder (!%p255_p0), %s1215_s12, 0 }
  0x2e   : > { %258 = sbr.rel (%p255_p0) target bundleno = 978 (0x3d2), region = 48  ;;  %s808_s16 = sshll.u32 (!%p255_p0), %s1119_s8, 3 }
  0x2f   : > { %s261_s11 = scalar_lea.sflag (!%p255_p0), [#allocation3], %s1119_s8  ;;  %s264_s23 = scalar_lea.vmem (!%p255_p0), [#allocation2], %s808_s16 }
  0x33   : > { %954 = dma.done.wait (%p1221_p6), %s261_s11, 128  }
  0x34   : > { %956 = vsyncadd (%p1221_p6), %s261_s11, 4294967168  ;;  %v978_v0 = vmov 0.0   ;;  %v979_v1 = vmov 0   ;;  %v1129_v2 = vld [vmem:[%s264_s23] sm:$0xff]  ;;  %vm313_vm0 = vcmask 1043456   ;;  %vm309_vm1 = vcmask 31744  }
  0x35   : > { %382 = vmatprep.mubr.f32.mxu0 %v978_v0  ;;  %461 = vmatprep.mubr.f32.mxu1 %v978_v0  ;;  %v308_v3 = vcombine.high %v1129_v2, %v1129_v2  ;;  %v300_v4 = vld [vmem:[%s1208_s4] sm:$0xf]  ;;  %vm618_vm2 = vcmask 27648   ;;  %s828_s20 = sshll.u32 %s1042_s28, 7  ;;  %s294_s22 = scalar_lea.vmem [#allocation5], %s808_s16 }
  0x36   : > { %877 = vset.pattern.permute.xlu0 %v979_v1  ;;  %v296_v5 = vld [vmem:[%s1205_s1] sm:$0xf]  ;;  %s731_s29 = sshll.u32 %s294_s22, 4  ;;  %s729_s18 = scalar_lea.hbm %s1211_s7, %s828_s20  ;;  %s732_s29 = int_to_ptr.vmem [resolvable:$true] %s731_s29 }
  0x37   : > { %v297_v6 = vld [vmem:[%s1207_s3] sm:$0xf]  ;;  %391 = vperm.xlu0 %877, %v300_v4   ;;  %810 = vmatprep.subr.msk.mxu0 %vm313_vm0, %v308_v3  ;;  %s717_s15 = scalar_lea.sflag [#allocation4], %s1119_s8  ;;  %s911_s19 = scalar_lea.vmem %s732_s29, 128 }
  0x38   : > { %813 = vmatprep.subr.msk.mxu1 %vm313_vm0, %v308_v3  ;;  %811 = vmatpush1.msk.msra.mxu0 %vm313_vm0, %v1129_v2  ;;  %v299_v7 = vld [vmem:[%s1206_s2] sm:$0xf]  ;;  %p912_p11 = scmp.ne.s32.totalorder %s732_s29, %s911_s19  ;;  %p1222_p12 = scmp.ne.s32.totalorder %s1216_s13, 0 }
  0x39   : > { %814 = vmatpush1.msk.msra.mxu1 %vm313_vm0, %v1129_v2  ;;  %812 = vmatmul.mubr.msk.f32.vlgmr.msra.gmra.mxu0 %vm309_vm1, %v296_v5  ;;  %v298_v8 = vld [vmem:[%s1209_s5] sm:$0xf]  ;;  %s980_s21 = smov [#allocation5]  }
  0x3a   : > { %815 = vmatmul.mubr.msk.f32.vlgmr.msra.gmra.mxu1 %vm309_vm1, %v297_v6  ;;  %816 = vmatprep.subr.msk.mxu0 %vm313_vm0, %v308_v3  ;;  %v301_v9 = vld [vmem:[%s1210_s6] sm:$0xf]  ;;  %p913_p13 = pnand %p912_p11, %p1222_p12  ;;  %s915_s28 = sshll.u32 %s980_s21, 4  ;;  %s916_s28 = int_to_ptr.vmem [resolvable:$false] %s915_s28 }
  0x3b   : > { %540 = vmatprep.mubr.f32.mxu0 %v978_v0  ;;  %817 = vmatpush1.msk.msra.mxu0 %vm313_vm0, %v1129_v2  ;;  %s917_s16 = scalar_lea.vmem %s916_s28, 256  ;;  %p918_p3 = scmp.lt.s32.totalorder %s732_s29, %s916_s28 }
  0x3c   : > { %304 = vperm.xlu0 %877, %v299_v7   ;;  %p914_p1 = pneg %p913_p13  ;;  %p919_p5 = scmp.lt.s32.totalorder %s917_s16, %s911_s19 }
  0x3d   : > { %818 = vmatmul.mubr.msk.f32.vlgmr.msra.gmra.mxu0 %vm309_vm1, %v298_v8 }
  0x3e   : > { %703 = vmatprep.mubr.f32.mxu0 %v978_v0  ;;  %p920_p8 = por %p919_p5, %p918_p3 }
  0x40   : > { %470 = vperm.xlu0 %877, %v301_v9   ;;  %p921_p10 = pnand %p920_p8, %p914_p1 }
  0xb2   : > { %v392_v10 = vpop.permute.xlu0 %391 }
  0xb7   : > { %v305_v11 = vpop.permute.xlu0 %304 }
  0xbb   : > { %v471_v20 = vpop.permute.xlu0 %470 }
  0xf9   : > { %v384_v12 = vpop.f32.mrf.mxu0 }
  0xfa   : > { %v463_v13 = vpop.f32.mrf.mxu1  ;;  %v385_v22 = vadd.f32 %v384_v12, %v305_v11 }
  0xfb   : > { %v386_v14 = vpop.f32.mrf.mxu0  ;;  %v464_v18 = vadd.f32 %v463_v13, %v392_v10 }
  0xfc   : > { %v465_v15 = vpop.f32.mrf.mxu1  ;;  %v387_v16 = vadd.f32 %v386_v14, %v305_v11 }
  0xfd   : > { %v466_v17 = vadd.f32 %v465_v15, %v392_v10  ;;  %v542_v19 = vpop.f32.mrf.mxu0 }
  0xfe   : > { %611 = vmatprep.mubr.f32.mxu1 %v387_v16  ;;  %v543_v24 = vadd.f32 %v542_v19, %v471_v20 }
  0xff   : > { %577 = vmatprep.subr.mxu1 %v466_v17  ;;  %v544_v21 = vpop.f32.mrf.mxu0 }
 0x100   : > { %578 = vmatpush1.xpose.msra.mxu1 %v464_v18  ;;  %v545_v23 = vadd.f32 %v544_v21, %v471_v20 }
 0x102   : > { %819 = vmatprep.subr.msk.mxu0 %vm313_vm0, %v545_v23 }
 0x103   : > { %612 = vmatmul.mubr.f32.vlgmr.msra.gmra.mxu1 %v385_v22  ;;  %820 = vmatpush1.msk.msra.mxu0 %vm313_vm0, %v543_v24 }
 0x1c3   : > { %v613_v25 = vpop.f32.mrf.mxu1 }
 0x1c4   : > { %v617_v26 = vmul.f32 0.5, %v613_v25 }
 0x1c5   : > { %v615_v27 = vpop.f32.mrf.mxu1 }
 0x1c6   : > { %v619_v28 = vsel %vm618_vm2, %v617_v26, -inf }
 0x1c7   : > { %620 = vmax.xlane.f32.xlu1 %v619_v28 }
 0x250   : > { %v621_v29 = vpop.xlane.xlu1 %620 }
 0x251   : > { %v622_v30 = vsub.f32 %v617_v26, %v621_v29 }
 0x253   : > { %v623_v31 = vmul.f32 1.442695, %v622_v30 }
 0x255   : > { %879 = vpow2.f32 %v623_v31 }
 0x262   : > { %v880_v32 = vpop.eup %879 }
 0x263   : > { %v625_v33 = vsel %vm618_vm2, %v880_v32, 0.0 }
 0x264   : > { %626 = vadd.xlane.f32.xlu1 %v625_v33 }
 0x2ed   : > { %v627_v34 = vpop.xlane.xlu1 %626 }
 0x2ee   : > { %881 = vrcp.f32 %v627_v34 }
 0x2fb   : > { %v882_v35 = vpop.eup %881 }
 0x2fc   : > { %v629_v36 = vmul.f32 %v882_v35, %v880_v32 }
 0x2fe   : > { %821 = vmatmul.mubr.msk.f32.vlgmr.msra.gmra.mxu0 %vm309_vm1, %v629_v36 }
 0x3be   : > { %v705_v37 = vpop.f32.mrf.mxu0 }
 0x3c0   : > { %v707_v38 = vpop.f32.mrf.mxu0 }
 0x3c1   : > { %v712_v39 = vcombine.low %v705_v37, %v707_v38 }
 0x3c3   : > { %v714_v40 = vadd.f32 %v712_v39, %v1129_v2 }
 0x3c5   : > { %715 = vst [vmem:[%s294_s22] sm:$0xff] %v714_v40 }
 0x3c6   : > { %924 = shalt.err (!%p921_p10)
}
 0x3c7   : > { %s925_s9 = scalar_lea.hbm %s729_s18, 128  ;;  %s929_s23 = scalar_lea.hbm %s1211_s7, 256 }
 0x3c8   : > { %p926_p2 = scmp.ne.s32.totalorder %s729_s18, %s925_s9  ;;  %p930_p7 = scmp.lt.s32.totalorder %s729_s18, %s1211_s7 }
 0x3c9   : > { %p931_p0 = scmp.lt.s32.totalorder %s929_s23, %s925_s9 }
 0x3ca   : > { %p927_p4 = pnand %p926_p2, %p1222_p12 }
 0x3cb   : > { %p932_p6 = por %p931_p0, %p930_p7 }
 0x3cc   : > { %p928_p9 = pneg %p927_p4 }
 0x3ce   : > { %p933_p11 = pnand %p932_p6, %p928_p9 }
 0x3d0   : > { %936 = shalt.err (!%p933_p11)
}
 0x3d1   : > { %831 = dma.vmem_to_hbm [thread:$0]  (%p1222_p12), %s732_s29, 128, %s729_s18, %s717_s15  }
 0x3d2 PF: > { %s743_s17 = sand.u32 1, %s963_s24   ;;  %p1223_p13 = scmp.ne.s32.totalorder %s1217_s14, 0 }
 0x3d3   : > { %p1224_p1 = scmp.ge.s32.totalorder %s975_s27, 2  ;;  %s744_s12 = scalar_lea.sflag [#allocation4], %s743_s17 }
 0x3d5   : > { %p838_p3 = pnand %p1224_p1, %p1223_p13 }
 0x3d7   : > { %p839_p5 = pneg %p838_p3 }
 0x3d9   : > { %958 = dma.done.wait (%p839_p5), %s744_s12, 128  }
 0x3da   : > { %960 = vsyncadd (%p839_p5), %s744_s12, 4294967168  ;;  %p20_p8 = scmp.ge.s32.totalorder %s1046_s30, 4   ;;  %s1225_s24 = smov %s967_s25 }
 0x3db   : > { %s1226_s25 = smov %s971_s26  ;;  %s1227_s26 = smov %s1058_s10 }
 0x3dc   : > { %s1228_s27 = smov %s1046_s30  ;;  %22 = sbr.rel (!%p20_p8) target bundleno = 5 (0x5), region = 93 }
 0x3e1   :  { %749 = vsyncpa [#allocation3], 1 }
 0x3e2   :  { %751 = vsyncpa [#allocation3 + $0x1], 1 }
 0x3e3   :  { %752 = vsyncpa [#allocation4], 1 }
 0x3e4   :  { %754 = vsyncpa [#allocation4 + $0x1], 1 }

</bundles_post_ra>
